<compile_context>
chip_gen: v7x
topology: tpu7x:2x2x1
jax: 0.10.0
libtpu: 0.0.40
codegen_flags: <defaults>
</compile_context>

<pallas_src>
import jax
import jax.numpy as jnp
from jax.experimental import pallas as pl
from jax.experimental.pallas import tpu as pltpu


# Rows handled per grid step (lane axis).  Per-row streamed footprint is ~40 B
# and live intermediates are ~200 B/row, so even 16384 rows double-buffered is
# only a few MiB -- far under the scoped-VMEM default on v5e/v6e/v7x.
_TILE_MAX = 16384


def _cdiv(a, b):
    return -(-a // b)


def _round_up(x, m):
    return _cdiv(x, m) * m


def _mlp_kernel(slab_ref, wb15_ref, wb26_ref, wb37_ref, wb48_ref, out_ref):
    f32 = jnp.float32

    # Packed per-layer [W | b] slabs; leading index 0 = stage 1, 1 = stage 2.
    wb1, wb5 = wb15_ref[0], wb15_ref[1]   # (12, 5)
    wb2, wb6 = wb26_ref[0], wb26_ref[1]   # (24, 13)
    wb3, wb7 = wb37_ref[0], wb37_ref[1]   # (8, 25)
    wb4, wb8 = wb48_ref[0], wb48_ref[1]   # (2, 9)

    w1, b1 = wb1[:, :4], wb1[:, 4:]
    w2, b2 = wb2[:, :12], wb2[:, 12:]
    w3, b3 = wb3[:, :24], wb3[:, 24:]
    w4, b4 = wb4[:, :8], wb4[:, 8:]
    w5, b5 = wb5[:, :4], wb5[:, 4:]
    w6, b6 = wb6[:, :12], wb6[:, 12:]
    w7, b7 = wb7[:, :24], wb7[:, 24:]
    w8, b8 = wb8[:, :8], wb8[:, 8:]
    # exact identity: W5 @ cat(x, u) == W5x @ x + W5u @ u
    w5x, w5u = w5[:, :2], w5[:, 2:4]

    # Input slab rows: 0:2 = x_k, 2:4 = u_k, 4:6 = u_k1 (feature-major).
    xu = slab_ref[0:4, :]          # cat(x_k, u_k)  -> (4, tile)
    u1 = slab_ref[4:6, :]          # u_k1           -> (2, tile)

    # ---- stage 1: x_{k+1} prediction --------------------------------------
    h = jnp.tanh(jnp.dot(w1, xu, preferred_element_type=f32) + b1)
    h = jnp.tanh(jnp.dot(w2, h, preferred_element_type=f32) + b2)
    h = jnp.tanh(jnp.dot(w3, h, preferred_element_type=f32) + b3)
    x_k1 = jnp.tanh(jnp.dot(w4, h, preferred_element_type=f32) + b4)

    # ---- stage 2: x_{k+2} prediction --------------------------------------
    h = jnp.tanh(
        jnp.dot(w5x, x_k1, preferred_element_type=f32)
        + jnp.dot(w5u, u1, preferred_element_type=f32)
        + b5
    )
    h = jnp.tanh(jnp.dot(w6, h, preferred_element_type=f32) + b6)
    h = jnp.tanh(jnp.dot(w7, h, preferred_element_type=f32) + b7)
    x_k2 = jnp.tanh(jnp.dot(w8, h, preferred_element_type=f32) + b8)

    # lane-dense output slab: rows 0:2 = x_k1_pred, rows 2:4 = x_k2_pred
    out_ref[0:2, :] = x_k1.astype(out_ref.dtype)
    out_ref[2:4, :] = x_k2.astype(out_ref.dtype)


def init_params(key):
    """PyTorch-style init U(-1/sqrt(fan_in), 1/sqrt(fan_in)).

    Weights kept in native (out, in) orientation; biases stored (out, 1) so
    they broadcast along the lane (row) axis inside the kernel.
    """
    dims = [
        (12, 4), (24, 12), (8, 24), (2, 8),   # W1..W4  (out, in)
        (12, 4), (24, 12), (8, 24), (2, 8),   # W5..W8
    ]
    params = {}
    for i, (fan_out, fan_in) in enumerate(dims, start=1):
        key, kw, kb = jax.random.split(key, 3)
        bound = 1.0 / jnp.sqrt(jnp.float32(fan_in))
        params[f"W{i}"] = jax.random.uniform(
            kw, (fan_out, fan_in), jnp.float32, -bound, bound
        )
        params[f"b{i}"] = jax.random.uniform(
            kb, (fan_out, 1), jnp.float32, -bound, bound
        )
    return params


def _pack_params(params):
    """Pack the 16 weight/bias tensors into 4 stacked [W | b] slabs."""
    def wb(i):
        return jnp.concatenate((params[f"W{i}"], params[f"b{i}"]), axis=1)

    return (
        jnp.stack((wb(1), wb(5))),   # (2, 12, 5)
        jnp.stack((wb(2), wb(6))),   # (2, 24, 13)
        jnp.stack((wb(3), wb(7))),   # (2, 8, 25)
        jnp.stack((wb(4), wb(8))),   # (2, 2, 9)
    )


@jax.jit
def ml_model_forward(params, x_k, u_k, u_k1):
    """x_k, u_k, u_k1: (B, T, 2) f32 -> (x_k1_pred, x_k2_pred): (B, T, 2)."""
    B, T, Fx = x_k.shape
    Fu = u_k.shape[-1]
    N = B * T

    # Row tile on the lane axis: multiple of 128, capped at _TILE_MAX, and
    # small enough that the grid has >=2 steps (v7x has 2 TensorCores).
    tile = min(_TILE_MAX, max(128, _round_up(_cdiv(N, 2), 128)))
    grid = (pl.cdiv(N, tile),)

    # Single feature-major input slab: rows = [x_k; u_k; u_k1], cols = B*T.
    slab = jnp.concatenate(
        (x_k.reshape(N, Fx), u_k.reshape(N, Fu), u_k1.reshape(N, Fu)), axis=1
    ).T                                                     # (6, N)

    packed = _pack_params(params)

    # activations: tiled along the row/lane axis (pipelined, ragged last block)
    slab_spec = pl.BlockSpec((Fx + 2 * Fu, tile), lambda i: (0, i))
    # packed weights: full-array blocks, constant index_map -> VMEM-resident
    wb_specs = [pl.BlockSpec(w.shape, lambda i: (0, 0, 0)) for w in packed]
    out_spec = pl.BlockSpec((2 * Fx, tile), lambda i: (0, i))

    out = pl.pallas_call(
        _mlp_kernel,
        out_shape=jax.ShapeDtypeStruct((2 * Fx, N), jnp.float32),
        grid=grid,
        in_specs=[slab_spec] + wb_specs,
        out_specs=out_spec,
        compiler_params=pltpu.CompilerParams(
            dimension_semantics=("parallel",),   # shard rows across v7x's 2 TCs
        ),
    )(slab, *packed)

    out_rm = out.T                                          # (N, 4), one pass
    x_k1_pred = out_rm[:, :Fx].reshape(B, T, Fx)
    x_k2_pred = out_rm[:, Fx:2 * Fx].reshape(B, T, Fx)
    return x_k1_pred, x_k2_pred


def _reference_forward(params, x_k, u_k, u_k1):
    """Pure-JAX reference matching the PyTorch module exactly."""
    def lin(h, i):
        return h @ params[f"W{i}"].T + params[f"b{i}"][:, 0]

    h1 = jnp.concatenate((x_k, u_k), axis=2)
    h1 = jnp.tanh(lin(h1, 1))
    h1 = jnp.tanh(lin(h1, 2))
    h1 = jnp.tanh(lin(h1, 3))
    x_k1_pred = jnp.tanh(lin(h1, 4))
    h2 = jnp.concatenate((x_k1_pred, u_k1), axis=2)
    h2 = jnp.tanh(lin(h2, 5))
    h2 = jnp.tanh(lin(h2, 6))
    h2 = jnp.tanh(lin(h2, 7))
    x_k2_pred = jnp.tanh(lin(h2, 8))
    return x_k1_pred, x_k2_pred


if __name__ == "__main__":
    key = jax.random.PRNGKey(0)
    kp, kx, ku, ku1 = jax.random.split(key, 4)

    params = init_params(kp)

    B, T = 2, 8  # feature dims fixed by the module (2 states, 2 inputs)
    x_k = jax.random.normal(kx, (B, T, 2), jnp.float32)
    u_k = jax.random.normal(ku, (B, T, 2), jnp.float32)
    u_k1 = jax.random.normal(ku1, (B, T, 2), jnp.float32)

    xk1, xk2 = ml_model_forward(params, x_k, u_k, u_k1)
    jax.block_until_ready((xk1, xk2))

    ref1, ref2 = _reference_forward(params, x_k, u_k, u_k1)
    assert jnp.allclose(xk1, ref1, atol=1e-5), "x_k1_pred mismatch"
    assert jnp.allclose(xk2, ref2, atol=1e-5), "x_k2_pred mismatch"

    print("KERNEL_OK")
</pallas_src>

<mosaic_0001>
module attributes {stable_mosaic.version = 11 : i64} {
  func.func @_mlp_kernel(%arg0: i32, %arg1: memref<6x128xf32, #tpu.memory_space<vmem>>, %arg2: memref<2x12x5xf32, #tpu.memory_space<vmem>>, %arg3: memref<2x24x13xf32, #tpu.memory_space<vmem>>, %arg4: memref<2x8x25xf32, #tpu.memory_space<vmem>>, %arg5: memref<2x2x9xf32, #tpu.memory_space<vmem>>, %arg6: memref<4x128xf32, #tpu.memory_space<vmem>>) attributes {dimension_semantics = [#tpu.dimension_semantics<parallel>], iteration_bounds = array<i64: 1>, scalar_prefetch = 0 : i64, scratch_operands = 0 : i64, tpu.core_type = #tpu.core_type<tc>, window_params = [{transform_indices = @transform_0, window_bounds = array<i64: 6, 128>}, {pipeline_mode = #tpu.pipeline_mode<synchronous>, transform_indices = @transform_1, window_bounds = array<i64: 2, 12, 5>}, {pipeline_mode = #tpu.pipeline_mode<synchronous>, transform_indices = @transform_2, window_bounds = array<i64: 2, 24, 13>}, {pipeline_mode = #tpu.pipeline_mode<synchronous>, transform_indices = @transform_3, window_bounds = array<i64: 2, 8, 25>}, {pipeline_mode = #tpu.pipeline_mode<synchronous>, transform_indices = @transform_4, window_bounds = array<i64: 2, 2, 9>}, {transform_indices = @transform_5, window_bounds = array<i64: 4, 128>}]} {
    %c0 = arith.constant 0 : index
    %c0_0 = arith.constant 0 : index
    %c0_1 = arith.constant 0 : index
    %0 = vector.load %arg2[%c0, %c0_0, %c0_1] : memref<2x12x5xf32, #tpu.memory_space<vmem>>, vector<1x12x5xf32>
    %1 = vector.shape_cast %0 : vector<1x12x5xf32> to vector<12x5xf32>
    %c1 = arith.constant 1 : index
    %c0_2 = arith.constant 0 : index
    %c0_3 = arith.constant 0 : index
    %2 = vector.load %arg2[%c1, %c0_2, %c0_3] : memref<2x12x5xf32, #tpu.memory_space<vmem>>, vector<1x12x5xf32>
    %3 = vector.shape_cast %2 : vector<1x12x5xf32> to vector<12x5xf32>
    %c0_4 = arith.constant 0 : index
    %c0_5 = arith.constant 0 : index
    %c0_6 = arith.constant 0 : index
    %4 = vector.load %arg3[%c0_4, %c0_5, %c0_6] : memref<2x24x13xf32, #tpu.memory_space<vmem>>, vector<1x24x13xf32>
    %5 = vector.shape_cast %4 : vector<1x24x13xf32> to vector<24x13xf32>
    %c1_7 = arith.constant 1 : index
    %c0_8 = arith.constant 0 : index
    %c0_9 = arith.constant 0 : index
    %6 = vector.load %arg3[%c1_7, %c0_8, %c0_9] : memref<2x24x13xf32, #tpu.memory_space<vmem>>, vector<1x24x13xf32>
    %7 = vector.shape_cast %6 : vector<1x24x13xf32> to vector<24x13xf32>
    %c0_10 = arith.constant 0 : index
    %c0_11 = arith.constant 0 : index
    %c0_12 = arith.constant 0 : index
    %8 = vector.load %arg4[%c0_10, %c0_11, %c0_12] : memref<2x8x25xf32, #tpu.memory_space<vmem>>, vector<1x8x25xf32>
    %9 = vector.shape_cast %8 : vector<1x8x25xf32> to vector<8x25xf32>
    %c1_13 = arith.constant 1 : index
    %c0_14 = arith.constant 0 : index
    %c0_15 = arith.constant 0 : index
    %10 = vector.load %arg4[%c1_13, %c0_14, %c0_15] : memref<2x8x25xf32, #tpu.memory_space<vmem>>, vector<1x8x25xf32>
    %11 = vector.shape_cast %10 : vector<1x8x25xf32> to vector<8x25xf32>
    %c0_16 = arith.constant 0 : index
    %c0_17 = arith.constant 0 : index
    %c0_18 = arith.constant 0 : index
    %12 = vector.load %arg5[%c0_16, %c0_17, %c0_18] : memref<2x2x9xf32, #tpu.memory_space<vmem>>, vector<1x2x9xf32>
    %13 = vector.shape_cast %12 : vector<1x2x9xf32> to vector<2x9xf32>
    %c1_19 = arith.constant 1 : index
    %c0_20 = arith.constant 0 : index
    %c0_21 = arith.constant 0 : index
    %14 = vector.load %arg5[%c1_19, %c0_20, %c0_21] : memref<2x2x9xf32, #tpu.memory_space<vmem>>, vector<1x2x9xf32>
    %15 = vector.shape_cast %14 : vector<1x2x9xf32> to vector<2x9xf32>
    %16 = vector.extract_strided_slice %1 {offsets = [0, 0], sizes = [12, 4], strides = [1, 1]} : vector<12x5xf32> to vector<12x4xf32>
    %17 = vector.extract_strided_slice %1 {offsets = [0, 4], sizes = [12, 1], strides = [1, 1]} : vector<12x5xf32> to vector<12x1xf32>
    %18 = vector.extract_strided_slice %5 {offsets = [0, 0], sizes = [24, 12], strides = [1, 1]} : vector<24x13xf32> to vector<24x12xf32>
    %19 = vector.extract_strided_slice %5 {offsets = [0, 12], sizes = [24, 1], strides = [1, 1]} : vector<24x13xf32> to vector<24x1xf32>
    %20 = vector.extract_strided_slice %9 {offsets = [0, 0], sizes = [8, 24], strides = [1, 1]} : vector<8x25xf32> to vector<8x24xf32>
    %21 = vector.extract_strided_slice %9 {offsets = [0, 24], sizes = [8, 1], strides = [1, 1]} : vector<8x25xf32> to vector<8x1xf32>
    %22 = vector.extract_strided_slice %13 {offsets = [0, 0], sizes = [2, 8], strides = [1, 1]} : vector<2x9xf32> to vector<2x8xf32>
    %23 = vector.extract_strided_slice %13 {offsets = [0, 8], sizes = [2, 1], strides = [1, 1]} : vector<2x9xf32> to vector<2x1xf32>
    %24 = vector.extract_strided_slice %3 {offsets = [0, 0], sizes = [12, 4], strides = [1, 1]} : vector<12x5xf32> to vector<12x4xf32>
    %25 = vector.extract_strided_slice %3 {offsets = [0, 4], sizes = [12, 1], strides = [1, 1]} : vector<12x5xf32> to vector<12x1xf32>
    %26 = vector.extract_strided_slice %7 {offsets = [0, 0], sizes = [24, 12], strides = [1, 1]} : vector<24x13xf32> to vector<24x12xf32>
    %27 = vector.extract_strided_slice %7 {offsets = [0, 12], sizes = [24, 1], strides = [1, 1]} : vector<24x13xf32> to vector<24x1xf32>
    %28 = vector.extract_strided_slice %11 {offsets = [0, 0], sizes = [8, 24], strides = [1, 1]} : vector<8x25xf32> to vector<8x24xf32>
    %29 = vector.extract_strided_slice %11 {offsets = [0, 24], sizes = [8, 1], strides = [1, 1]} : vector<8x25xf32> to vector<8x1xf32>
    %30 = vector.extract_strided_slice %15 {offsets = [0, 0], sizes = [2, 8], strides = [1, 1]} : vector<2x9xf32> to vector<2x8xf32>
    %31 = vector.extract_strided_slice %15 {offsets = [0, 8], sizes = [2, 1], strides = [1, 1]} : vector<2x9xf32> to vector<2x1xf32>
    %32 = vector.extract_strided_slice %24 {offsets = [0, 0], sizes = [12, 2], strides = [1, 1]} : vector<12x4xf32> to vector<12x2xf32>
    %33 = vector.extract_strided_slice %24 {offsets = [0, 2], sizes = [12, 2], strides = [1, 1]} : vector<12x4xf32> to vector<12x2xf32>
    %c0_22 = arith.constant 0 : index
    %c0_23 = arith.constant 0 : index
    %34 = vector.load %arg1[%c0_22, %c0_23] : memref<6x128xf32, #tpu.memory_space<vmem>>, vector<4x128xf32>
    %c4 = arith.constant 4 : index
    %c0_24 = arith.constant 0 : index
    %35 = vector.load %arg1[%c4, %c0_24] : memref<6x128xf32, #tpu.memory_space<vmem>>, vector<2x128xf32>
    %cst = arith.constant dense<0.000000e+00> : vector<12x128xf32>
    %36 = tpu.matmul %16, %34, %cst {dimension_numbers = #tpu.dot_dimension_numbers<[1], [0], [0], [1], [0, 0, 1, 1], [], []>} : vector<12x4xf32>, vector<4x128xf32>, vector<12x128xf32> -> vector<12x128xf32>
    %37 = vector.broadcast %17 : vector<12x1xf32> to vector<12x128xf32>
    %38 = arith.addf %36, %37 : vector<12x128xf32>
    %39 = math.tanh %38 : vector<12x128xf32>
    %cst_25 = arith.constant dense<0.000000e+00> : vector<24x128xf32>
    %40 = tpu.matmul %18, %39, %cst_25 {dimension_numbers = #tpu.dot_dimension_numbers<[1], [0], [0], [1], [0, 0, 1, 1], [], []>} : vector<24x12xf32>, vector<12x128xf32>, vector<24x128xf32> -> vector<24x128xf32>
    %41 = vector.broadcast %19 : vector<24x1xf32> to vector<24x128xf32>
    %42 = arith.addf %40, %41 : vector<24x128xf32>
    %43 = math.tanh %42 : vector<24x128xf32>
    %cst_26 = arith.constant dense<0.000000e+00> : vector<8x128xf32>
    %44 = tpu.matmul %20, %43, %cst_26 {dimension_numbers = #tpu.dot_dimension_numbers<[1], [0], [0], [1], [0, 0, 1, 1], [], []>} : vector<8x24xf32>, vector<24x128xf32>, vector<8x128xf32> -> vector<8x128xf32>
    %45 = vector.broadcast %21 : vector<8x1xf32> to vector<8x128xf32>
    %46 = arith.addf %44, %45 : vector<8x128xf32>
    %47 = math.tanh %46 : vector<8x128xf32>
    %cst_27 = arith.constant dense<0.000000e+00> : vector<2x128xf32>
    %48 = tpu.matmul %22, %47, %cst_27 {dimension_numbers = #tpu.dot_dimension_numbers<[1], [0], [0], [1], [0, 0, 1, 1], [], []>} : vector<2x8xf32>, vector<8x128xf32>, vector<2x128xf32> -> vector<2x128xf32>
    %49 = vector.broadcast %23 : vector<2x1xf32> to vector<2x128xf32>
    %50 = arith.addf %48, %49 : vector<2x128xf32>
    %51 = math.tanh %50 : vector<2x128xf32>
    %cst_28 = arith.constant dense<0.000000e+00> : vector<12x128xf32>
    %52 = tpu.matmul %32, %51, %cst_28 {dimension_numbers = #tpu.dot_dimension_numbers<[1], [0], [0], [1], [0, 0, 1, 1], [], []>} : vector<12x2xf32>, vector<2x128xf32>, vector<12x128xf32> -> vector<12x128xf32>
    %cst_29 = arith.constant dense<0.000000e+00> : vector<12x128xf32>
    %53 = tpu.matmul %33, %35, %cst_29 {dimension_numbers = #tpu.dot_dimension_numbers<[1], [0], [0], [1], [0, 0, 1, 1], [], []>} : vector<12x2xf32>, vector<2x128xf32>, vector<12x128xf32> -> vector<12x128xf32>
    %54 = arith.addf %52, %53 : vector<12x128xf32>
    %55 = vector.broadcast %25 : vector<12x1xf32> to vector<12x128xf32>
    %56 = arith.addf %54, %55 : vector<12x128xf32>
    %57 = math.tanh %56 : vector<12x128xf32>
    %cst_30 = arith.constant dense<0.000000e+00> : vector<24x128xf32>
    %58 = tpu.matmul %26, %57, %cst_30 {dimension_numbers = #tpu.dot_dimension_numbers<[1], [0], [0], [1], [0, 0, 1, 1], [], []>} : vector<24x12xf32>, vector<12x128xf32>, vector<24x128xf32> -> vector<24x128xf32>
    %59 = vector.broadcast %27 : vector<24x1xf32> to vector<24x128xf32>
    %60 = arith.addf %58, %59 : vector<24x128xf32>
    %61 = math.tanh %60 : vector<24x128xf32>
    %cst_31 = arith.constant dense<0.000000e+00> : vector<8x128xf32>
    %62 = tpu.matmul %28, %61, %cst_31 {dimension_numbers = #tpu.dot_dimension_numbers<[1], [0], [0], [1], [0, 0, 1, 1], [], []>} : vector<8x24xf32>, vector<24x128xf32>, vector<8x128xf32> -> vector<8x128xf32>
    %63 = vector.broadcast %29 : vector<8x1xf32> to vector<8x128xf32>
    %64 = arith.addf %62, %63 : vector<8x128xf32>
    %65 = math.tanh %64 : vector<8x128xf32>
    %cst_32 = arith.constant dense<0.000000e+00> : vector<2x128xf32>
    %66 = tpu.matmul %30, %65, %cst_32 {dimension_numbers = #tpu.dot_dimension_numbers<[1], [0], [0], [1], [0, 0, 1, 1], [], []>} : vector<2x8xf32>, vector<8x128xf32>, vector<2x128xf32> -> vector<2x128xf32>
    %67 = vector.broadcast %31 : vector<2x1xf32> to vector<2x128xf32>
    %68 = arith.addf %66, %67 : vector<2x128xf32>
    %69 = math.tanh %68 : vector<2x128xf32>
    %c0_33 = arith.constant 0 : index
    %c0_34 = arith.constant 0 : index
    %70 = vector.load %arg6[%c0_33, %c0_34] : memref<4x128xf32, #tpu.memory_space<vmem>>, vector<2x128xf32>
    tpu.vector_store %arg6[%c0_33, %c0_34], %51 {strides = array<i32>} : memref<4x128xf32, #tpu.memory_space<vmem>>, vector<2x128xf32>,
    %c2 = arith.constant 2 : index
    %c0_35 = arith.constant 0 : index
    %71 = vector.load %arg6[%c2, %c0_35] : memref<4x128xf32, #tpu.memory_space<vmem>>, vector<2x128xf32>
    tpu.vector_store %arg6[%c2, %c0_35], %69 {strides = array<i32>} : memref<4x128xf32, #tpu.memory_space<vmem>>, vector<2x128xf32>,
    return
  }
  func.func @transform_0(%arg0: i32) -> (i32, i32) {
    %c0_i32 = arith.constant 0 : i32
    %c0_i32_0 = arith.constant 0 : i32
    return %c0_i32, %arg0 : i32, i32
  }
  func.func @transform_1(%arg0: i32) -> (i32, i32, i32) {
    %c0_i32 = arith.constant 0 : i32
    %c0_i32_0 = arith.constant 0 : i32
    %c0_i32_1 = arith.constant 0 : i32
    %c0_i32_2 = arith.constant 0 : i32
    return %c0_i32, %c0_i32_0, %c0_i32_1 : i32, i32, i32
  }
  func.func @transform_2(%arg0: i32) -> (i32, i32, i32) {
    %c0_i32 = arith.constant 0 : i32
    %c0_i32_0 = arith.constant 0 : i32
    %c0_i32_1 = arith.constant 0 : i32
    %c0_i32_2 = arith.constant 0 : i32
    return %c0_i32, %c0_i32_0, %c0_i32_1 : i32, i32, i32
  }
  func.func @transform_3(%arg0: i32) -> (i32, i32, i32) {
    %c0_i32 = arith.constant 0 : i32
    %c0_i32_0 = arith.constant 0 : i32
    %c0_i32_1 = arith.constant 0 : i32
    %c0_i32_2 = arith.constant 0 : i32
    return %c0_i32, %c0_i32_0, %c0_i32_1 : i32, i32, i32
  }
  func.func @transform_4(%arg0: i32) -> (i32, i32, i32) {
    %c0_i32 = arith.constant 0 : i32
    %c0_i32_0 = arith.constant 0 : i32
    %c0_i32_1 = arith.constant 0 : i32
    %c0_i32_2 = arith.constant 0 : i32
    return %c0_i32, %c0_i32_0, %c0_i32_1 : i32, i32, i32
  }
  func.func @transform_5(%arg0: i32) -> (i32, i32) {
    %c0_i32 = arith.constant 0 : i32
    %c0_i32_0 = arith.constant 0 : i32
    return %c0_i32, %arg0 : i32, i32
  }
}

</mosaic_0001>

<bundles_post_ra>
// kernel: ml_model_forward.1
= control target key start
LH: loop header
LB: loop body
LE: loop exit
PB: predicated region body
PF: predicated region fallthrough
CT: control target
= control target key end

     0   :  { %vm55_vm0 = vcmask 1043456   ;;  %vm50_vm1 = vcmask 31744   ;;  %v1047_v2 = vmov 4   ;;  %v1048_v4 = vmov 0.0|0.0   ;;  %s1055_s11 = smov 126   ;;  %s1202_s0 = inlined_call_operand.vmem [shape: f32[6,16], index: 0, kind: input, shape index: {}]   ;;  %s1203_s1 = inlined_call_operand.vmem [shape: f32[2,12,5], index: 1, kind: input, shape index: {}]   ;;  %s1204_s2 = inlined_call_operand.vmem [shape: f32[2,24,13], index: 2, kind: input, shape index: {}]   ;;  %s1205_s3 = inlined_call_operand.vmem [shape: f32[2,8,25], index: 3, kind: input, shape index: {}]   ;;  %s1206_s4 = inlined_call_operand.vmem [shape: f32[2,2,9], index: 4, kind: input, shape index: {}]   ;;  %s1207_s5 = inlined_call_operand.vmem [shape: f32[4,16], index: 5, kind: output, shape index: {}]  }
   0x1   :  { %v38_v0 = vld [vmem:[%s1202_s0] sm:$0xf]  ;;  %1008 = vset.pattern.permute.xlu0 %v1047_v2  ;;  %v21_v3 = vld [vmem:[%s1203_s1 + $0x8] sm:$0xf]  ;;  %983 = vmatprep.subr.bf16.mxu1 %v1048_v4  ;;  %vm1049_vm2 = vmmov 0   ;;  %v1050_v5 = vmov 0.0  }
   0x2   :  { %v20_v1 = vld [vmem:[%s1203_s1] sm:$0xff]  ;;  %914 = vmatprep.subr.msk.mxu0 %vm55_vm0, %v38_v0  ;;  %923 = vmatprep.mubr.msk.f32.mxu1 %vm1049_vm2, %v1050_v5  ;;  %v27_v7 = vld [vmem:[%s1204_s2 + $0x10] sm:$0xff]  ;;  %v1051_v8 = vmov 12   ;;  %v26_v9 = vld [vmem:[%s1204_s2 + $0x8] sm:$0xff]  ;;  %vm1052_vm3 = vmmov 1   ;;  %vm151_vm5 = vcmask 97280  }
   0x3   :  { %916 = vmatprep.mubr.msk.f32.mxu0 %vm50_vm1, %v20_v1  ;;  %915 = vmatpush3.msk.msra.mxu0 %vm55_vm0, %v38_v0  ;;  %v25_v6 = vld [vmem:[%s1204_s2] sm:$0xff]  ;;  %vm1117_vm4 = vmpackc.low %vm55_vm0, %vm1052_vm3  ;;  %v1053_v21 = vmov 24   ;;  %vm249_vm6 = vcmask 195584   ;;  %v855_v38 = vld [vmem:[%s1203_s1 + $0x10] sm:$0xff]  ;;  %v1054_v40 = vmov 8   ;;  %vm328_vm7 = vcmask 64512  }
   0x4   :  { %42 = vperm.xlu0 %1008, %v20_v1   ;;  %917 = vmatmul.mubr.msk.f32.vlgmr.msra.gmra.mrb[0].mxu0 %vm50_vm1, %v21_v3  ;;  %v32_v20 = vld [vmem:[%s1205_s3] sm:$0xff]  ;;  %v856_v41 = vld [vmem:[%s1203_s1 + $0x18] sm:$0xf]  ;;  %vm413_vm8 = vcmask 1041408   ;;  %vm408_vm9 = vcmask 15360   ;;  %v859_v57 = vld [vmem:[%s1204_s2 + $0x28] sm:$0xff] }
   0x5   :  { %987 = vmatprep.subr.bf16.mxu0 %v1048_v4  ;;  %938 = vmatprep.mubr.msk.f32.mxu0 %vm1049_vm2, %v1050_v5  ;;  %v35_v39 = vld [vmem:[%s1206_s4] sm:$0x3]  ;;  %v39_v48 = vld [vmem:[%s1202_s0 + $0x4] sm:$0x3]  ;;  %v857_v55 = vld [vmem:[%s1204_s2 + $0x18] sm:$0xff] }
   0x6   :  { %1009 = vset.pattern.permute.xlu1 %v1051_v8  ;;  %v858_v56 = vld [vmem:[%s1204_s2 + $0x20] sm:$0xff] }
   0x7   :  { %138 = vperm.xlu1 %1009, %v25_v6   ;;  %v861_v58 = vld [vmem:[%s1206_s4 + $0x2] sm:$0x3] }
   0x8   :  { %47 = vperm.xlu0 %1008, %v21_v3  }
   0xb   :  { %143 = vperm.xlu1 %1009, %v26_v9  }
   0xc   :  { %1010 = vset.pattern.permute.xlu0 %v1051_v8 }
   0xd   :  { %148 = vperm.xlu0 %1010, %v27_v7  }
   0xf   :  { %1011 = vset.pattern.permute.xlu1 %v1053_v21 }
  0x10   :  { %246 = vperm.xlu1 %1011, %v32_v20  }
  0x11   :  { %1013 = vset.pattern.permute.xlu0 %v1047_v2 }
  0x12   :  { %404 = vrot.lane.b32.xlu0 %v855_v38, %s1055_s11 }
  0x14   :  { %1012 = vset.pattern.permute.xlu1 %v1054_v40 }
  0x15   :  { %325 = vperm.xlu1 %1012, %v35_v39  }
  0x16   :  { %575 = vperm.xlu0 %1013, %v855_v38  }
  0x19   :  { %406 = vrot.lane.b32.xlu1 %v856_v41, %s1055_s11 }
  0x1a   :  { %1014 = vset.pattern.permute.xlu1 %v1047_v2  ;;  %1016 = vset.pattern.permute.xlu0 %v1051_v8 }
  0x1b   :  { %593 = vperm.xlu0 %1016, %v858_v56  }
  0x1d   :  { %579 = vperm.xlu1 %1014, %v856_v41  }
  0x1f   :  { %1018 = vset.pattern.permute.xlu0 %v1054_v40 }
  0x20   :  { %773 = vperm.xlu0 %1018, %v861_v58  }
  0x21   :  { %1015 = vset.pattern.permute.xlu1 %v1051_v8 }
  0x22   :  { %588 = vperm.xlu1 %1015, %v857_v55  }
  0x26   :  { %598 = vperm.xlu1 %1015, %v859_v57  }
  0x2a   :  { %1017 = vset.pattern.permute.xlu1 %v1053_v21 }
  0x83   :  { %v43_v10 = vpop.permute.xlu0 %42 }
  0x86   :  { %v139_v22 = vpop.permute.xlu1 %138 }
  0x87   :  { %v48_v11 = vpop.permute.xlu0 %47 }
  0x8a   :  { %v144_v26 = vpop.permute.xlu1 %143 }
  0x8c   :  { %v149_v30 = vpop.permute.xlu0 %148 }
  0x8f   :  { %v247_v42 = vpop.permute.xlu1 %246 }
  0x90   :  { %v405_v49 = vpop.permute.xlu0 %404 }
  0x94   :  { %v326_v47 = vpop.permute.xlu1 %325 }
  0x95   :  { %v576_v60 = vpop.permute.xlu0 %575 }
  0x98   :  { %v407_v50 = vpop.permute.xlu1 %406 }
  0x9c   :  { %v580_v59 = vpop.permute.xlu1 %579 }
  0xd7   :  { %v918_v12 = vpop.f32.mrb[0].mxu0 }
  0xd8   :  { %v131_v13 = vadd.f32 %v918_v12, %v48_v11  ;;  %v125_v14 = vpop.f32.mrb[1].mxu0 }
  0xd9   :  { %v126_v15 = vadd.f32 %v125_v14, %v43_v10  ;;  %v594_v10 = vpop.permute.xlu0 %593 }
  0xda   :  { %1019 = vtanh.f32 %v131_v13 }
  0xdb   :  { %1021 = vtanh.f32 %v126_v15 }
  0xe4   :  { %v1020_v16 = vpop.eup %1019 }
  0xe5   :  { %v1022_v17 = vpop.eup %1021 }
  0xe6   :  { %v984_v19 = vpack.c.bf16 %v1020_v16, %v1022_v17 }
  0xe8   :  { %986 = vmatpush3.bf16.msk.msra.mxu1 %vm1117_vm4, %v984_v19 }
  0xe9   :  { %990 = vmatprep.subr.bf16.mxu1 %v1048_v4 }
  0xeb   :  { %924 = vmatmul.mubr.msk.f32.vlgmr.msra.gmra.mrb[0].mxu1 %vm151_vm5, %v25_v6  ;;  %v589_v6 = vpop.permute.xlu1 %588 }
  0xec   :  { %926 = vmatprep.mubr.msk.f32.mxu1 %vm1049_vm2, %v1050_v5 }
  0xef   :  { %927 = vmatmul.mubr.msk.f32.gmra.mrb[2].mxu1 %vm151_vm5, %v26_v9  ;;  %v599_v14 = vpop.permute.xlu1 %598 }
  0xf0   :  { %929 = vmatprep.mubr.msk.f32.mxu1 %vm1049_vm2, %v1050_v5 }
  0xf3   :  { %930 = vmatmul.mubr.msk.f32.gmra.mrb[4].mxu1 %vm151_vm5, %v27_v7 }
  0xf4   :  { %960 = vmatprep.mubr.msk.f32.mxu1 %vm1049_vm2, %v1050_v5 }
 0x1be   :  { %v227_v23 = vpop.f32.mrb[0].mxu1 }
 0x1bf   :  { %v925_v24 = vpop.f32.mrb[1].mxu1  ;;  %v228_v25 = vadd.f32 %v227_v23, %v139_v22 }
 0x1c1   :  { %1023 = vtanh.f32 %v228_v25 }
 0x1c2   :  { %v232_v27 = vpop.f32.mrb[2].mxu1 }
 0x1c3   :  { %v233_v28 = vadd.f32 %v232_v27, %v144_v26  ;;  %v928_v29 = vpop.f32.mrb[3].mxu1  ;;  %v774_v27 = vpop.permute.xlu0 %773 }
 0x1c5   :  { %1025 = vtanh.f32 %v233_v28 }
 0x1c6   :  { %v237_v31 = vpop.f32.mrb[4].mxu1 }
 0x1c7   :  { %v238_v32 = vadd.f32 %v237_v31, %v149_v30  ;;  %v931_v33 = vpop.f32.mrb[5].mxu1 }
 0x1c9   :  { %1027 = vtanh.f32 %v238_v32 }
 0x1cb   :  { %v1024_v34 = vpop.eup %1023 }
 0x1cf   :  { %v1026_v35 = vpop.eup %1025 }
 0x1d0   :  { %v988_v36 = vpack.c.bf16 %v1026_v35, %v1024_v34 }
 0x1d2   :  { %989 = vmatpush3.bf16.msra.mxu0 %v988_v36 }
 0x1d3   :  { %v1028_v37 = vpop.eup %1027  ;;  %936 = vmatprep.subr.mxu0 %v1050_v5 }
 0x1d6   :  { %937 = vmatpush3.msra.mxu0 %v1028_v37 }
 0x1d7   :  { %939 = vmatmul.mubr.msk.f32.vlgmr.msra.gmra.mrb[2].mxu0 %vm249_vm6, %v32_v20  ;;  %941 = vmatprep.subr.mxu0 %v1050_v5 }
 0x1d8   :  { %943 = vmatprep.mubr.msk.f32.mxu0 %vm1049_vm2, %v1050_v5 }
 0x2aa   :  { %v318_v43 = vpop.f32.mrb[2].mxu0 }
 0x2ab   :  { %v319_v44 = vadd.f32 %v318_v43, %v247_v42  ;;  %v940_v45 = vpop.f32.mrb[3].mxu0 }
 0x2ad   :  { %1029 = vtanh.f32 %v319_v44 }
 0x2b7   :  { %v1030_v46 = vpop.eup %1029 }
 0x2b8   :  { %942 = vmatpush3.msra.mxu0 %v1030_v46 }
 0x2b9   :  { %944 = vmatmul.mubr.msk.f32.vlgmr.msra.gmra.mrb[4].mxu0 %vm328_vm7, %v35_v39  ;;  %946 = vmatprep.subr.msk.mxu0 %vm413_vm8, %v39_v48 }
 0x2ba   :  { %948 = vmatprep.mubr.msk.f32.mxu0 %vm408_vm9, %v405_v49  ;;  %947 = vmatpush3.msk.msra.mxu0 %vm413_vm8, %v39_v48 }
 0x2bd   :  { %949 = vmatmul.mubr.msk.f32.vlgmr.msra.gmra.mrb[6].mxu0 %vm408_vm9, %v407_v50 }
 0x2be   :  { %953 = vmatprep.mubr.msk.f32.mxu0 %vm408_vm9, %v855_v38 }
 0x38c   :  { %v397_v51 = vpop.f32.mrb[4].mxu0 }
 0x38d   :  { %v398_v52 = vadd.f32 %v397_v51, %v326_v47  ;;  %v945_v53 = vpop.f32.mrb[5].mxu0 }
 0x38f   :  { %1031 = vtanh.f32 %v398_v52 }
 0x399   :  { %v1032_v54 = vpop.eup %1031 }
 0x39a   :  { %951 = vmatprep.subr.msk.mxu0 %vm413_vm8, %v1032_v54  ;;  %849 = vst [vmem:[%s1207_s5] sm:$0x3] %v1032_v54 }
 0x39b   :  { %952 = vmatpush3.msk.msra.mxu0 %vm413_vm8, %v1032_v54 }
 0x39c   :  { %954 = vmatmul.mubr.msk.f32.vlgmr.msra.gmra.mrb[6].mxu0 %vm408_vm9, %v856_v41  ;;  %994 = vmatprep.subr.bf16.mxu0 %v1048_v4  ;;  %v860_v4 = vld [vmem:[%s1205_s3 + $0x8] sm:$0xff] }
 0x39d   :  { %975 = vmatprep.mubr.msk.f32.mxu0 %vm1049_vm2, %v1050_v5  ;;  %695 = vperm.xlu1 %1017, %v860_v4  }
 0x41c   :  { %v696_v22 = vpop.permute.xlu1 %695 }
 0x46f   :  { %v955_v61 = vpop.f32.mrb[6].mxu0 }
 0x470   :  { %v583_v62 = vadd.f32 %v955_v61, %v580_v59  ;;  %v565_v63 = vpop.f32.mrb[7].mxu0 }
 0x471   :  { %v582_v0 = vadd.f32 %v576_v60, %v565_v63 }
 0x472   :  { %1033 = vtanh.f32 %v583_v62 }
 0x473   :  { %1035 = vtanh.f32 %v582_v0 }
 0x47c   :  { %v1034_v1 = vpop.eup %1033 }
 0x47d   :  { %v1036_v2 = vpop.eup %1035 }
 0x47e   :  { %v991_v3 = vpack.c.bf16 %v1034_v1, %v1036_v2 }
 0x480   :  { %993 = vmatpush3.bf16.msk.msra.mxu1 %vm1117_vm4, %v991_v3 }
 0x481   :  { %978 = vmatprep.subr.mxu1 %v1050_v5 }
 0x483   :  { %961 = vmatmul.mubr.msk.f32.vlgmr.msra.gmra.mrb[6].mxu1 %vm151_vm5, %v857_v55 }
 0x484   :  { %963 = vmatprep.mubr.msk.f32.mxu1 %vm1049_vm2, %v1050_v5 }
 0x487   :  { %964 = vmatmul.mubr.msk.f32.gmra.mrb[8].mxu1 %vm151_vm5, %v858_v56 }
 0x488   :  { %966 = vmatprep.mubr.msk.f32.mxu1 %vm1049_vm2, %v1050_v5 }
 0x48b   :  { %967 = vmatmul.mubr.msk.f32.gmra.mrb[10].mxu1 %vm151_vm5, %v859_v57 }
 0x48c   :  { %980 = vmatprep.mubr.msk.f32.mxu1 %vm1049_vm2, %v1050_v5 }
 0x556   :  { %v676_v7 = vpop.f32.mrb[6].mxu1 }
 0x557   :  { %v962_v8 = vpop.f32.mrb[7].mxu1  ;;  %v677_v9 = vadd.f32 %v676_v7, %v589_v6 }
 0x559   :  { %1037 = vtanh.f32 %v677_v9 }
 0x55a   :  { %v681_v11 = vpop.f32.mrb[8].mxu1 }
 0x55b   :  { %v682_v12 = vadd.f32 %v681_v11, %v594_v10  ;;  %v965_v13 = vpop.f32.mrb[9].mxu1 }
 0x55d   :  { %1039 = vtanh.f32 %v682_v12 }
 0x55e   :  { %v686_v15 = vpop.f32.mrb[10].mxu1 }
 0x55f   :  { %v687_v16 = vadd.f32 %v686_v15, %v599_v14  ;;  %v968_v17 = vpop.f32.mrb[11].mxu1 }
 0x561   :  { %1041 = vtanh.f32 %v687_v16 }
 0x563   :  { %v1038_v18 = vpop.eup %1037 }
 0x567   :  { %v1040_v19 = vpop.eup %1039 }
 0x568   :  { %v995_v20 = vpack.c.bf16 %v1040_v19, %v1038_v18 }
 0x56a   :  { %996 = vmatpush3.bf16.msra.mxu0 %v995_v20 }
 0x56b   :  { %973 = vmatprep.subr.mxu0 %v1050_v5  ;;  %v1042_v21 = vpop.eup %1041 }
 0x56e   :  { %974 = vmatpush3.msra.mxu0 %v1042_v21 }
 0x56f   :  { %976 = vmatmul.mubr.msk.f32.vlgmr.msra.gmra.mrb[8].mxu0 %vm249_vm6, %v860_v4 }
 0x642   :  { %v766_v23 = vpop.f32.mrb[8].mxu0 }
 0x643   :  { %v767_v24 = vadd.f32 %v766_v23, %v696_v22  ;;  %v977_v25 = vpop.f32.mrb[9].mxu0 }
 0x645   :  { %1043 = vtanh.f32 %v767_v24 }
 0x64f   :  { %v1044_v26 = vpop.eup %1043 }
 0x650   :  { %979 = vmatpush3.msra.mxu1 %v1044_v26 }
 0x651   :  { %981 = vmatmul.mubr.msk.f32.vlgmr.msra.gmra.mrb[12].mxu1 %vm328_vm7, %v861_v58 }
 0x724   :  { %v844_v28 = vpop.f32.mrb[12].mxu1 }
 0x725   :  { %v845_v29 = vadd.f32 %v844_v28, %v774_v27  ;;  %v982_v30 = vpop.f32.mrb[13].mxu1 }
 0x727   :  { %1045 = vtanh.f32 %v845_v29 }
 0x731   :  { %v1046_v31 = vpop.eup %1045 }
 0x732   :  { %850 = vst [vmem:[%s1207_s5 + $0x2] sm:$0x3] %v1046_v31 }

</bundles_post_ra>
